<compile_context>
chip_gen: v7x
topology: tpu7x:2x2x1
jax: 0.10.0
libtpu: 0.0.40
codegen_flags: <defaults>
</compile_context>

<pallas_src>
import functools

import jax
import jax.numpy as jnp
import numpy as np
from jax import lax
from jax.experimental import pallas as pl
from jax.experimental.pallas import tpu as pltpu

N, H, W = 2, 16, 16          # batch, spatial
CIN, COUT = 4, 8             # InceptionBlock in/out channels
BN_EPS = 1e-5
KMAX = 5                     # largest depthwise kernel; all branches index its 5x5 tap grid
NTAPS = KMAX * KMAX          # 25
CPAD = max(8, ((CIN + 7) // 8) * 8)   # sublane-aligned rows per tap


# --------------------------------------------------------------------------
# Pallas kernel: one bf16 MXU matmul for the 3 folded conv branches, a VPU
# K=Cin projection for the pooled branch, SiLU on the EUP, unmasked bf16 stores.
# --------------------------------------------------------------------------
def _inception_kernel(xcol_ref, wc_ref, wpool_ref, bias_ref, o_ref,
                      *, h, w, cin, cout, cpad):
    p = xcol_ref.shape[-1]                     # columns in this block (multiple of h*w)

    # Pixel coordinates of every column (batch folded into the column axis; block
    # boundaries fall on image boundaries — guarded in the wrapper; h, w powers of 2).
    lane = lax.broadcasted_iota(jnp.int32, (1, p), 1)
    ww_idx = lane & (w - 1)
    hh_idx = (lane >> (w.bit_length() - 1)) & (h - 1)
    # Four boundary masks, computed once and OR-combined per pooling tap.
    top = hh_idx == 0
    bot = hh_idx == (h - 1)
    lft = ww_idx == 0
    rgt = ww_idx == (w - 1)

    def tap(di, dj):                           # (cin, p) slab of one 5x5 im2col tap
        r0 = (di * KMAX + dj) * cpad           # 8-row aligned start
        return xcol_ref[r0:r0 + cin, :].astype(jnp.float32)

    # ---- pooling-branch input: 3x3 max-pool with -inf outside the image ----------
    neg_inf = jnp.float32(-jnp.inf)
    mp = tap(2, 2)                             # center tap: always in-bounds
    for di in range(1, 4):
        for dj in range(1, 4):
            if (di, dj) == (2, 2):
                continue
            dh, dw = di - 2, dj - 2
            conds = []
            if dh < 0:
                conds.append(top)
            elif dh > 0:
                conds.append(bot)
            if dw < 0:
                conds.append(lft)
            elif dw > 0:
                conds.append(rgt)
            oob = conds[0]
            for c in conds[1:]:
                oob = oob | c
            mp = jnp.maximum(mp, jnp.where(oob, neg_inf, tap(di, dj)))

    # ---- k=1/3/5 branches: depthwise+pointwise+BN folded -> ONE bf16 MXU matmul ---
    z = jnp.dot(wc_ref[...], xcol_ref[...],
                preferred_element_type=jnp.float32)        # (3*cout, p) f32

    # ---- pooling branch: K=cin projection on the VPU (no second MXU matmul) -------
    wp = wpool_ref[...]                                    # (cout, cin) f32
    zp = wp[:, 0:1] * mp[0:1, :]
    for ci in range(1, cin):
        zp = zp + wp[:, ci:ci + 1] * mp[ci:ci + 1, :]      # (cout, p) f32

    b = bias_ref[...]                                      # (4*cout, 1) f32

    def silu(v):                                           # logistic on the EUP
        return v * lax.logistic(v)

    out = (silu(z[0 * cout:1 * cout, :] + b[0 * cout:1 * cout, :])
           + silu(z[1 * cout:2 * cout, :] + b[1 * cout:2 * cout, :])
           + silu(z[2 * cout:3 * cout, :] + b[2 * cout:3 * cout, :])
           + silu(zp + b[3 * cout:4 * cout, :]))
    o_ref[...] = out.astype(o_ref.dtype)                   # lane-dense bf16 store


# --------------------------------------------------------------------------
# Wrapper: layout plumbing (im2col into one lane-dense bf16 slab) + pallas_call.
# --------------------------------------------------------------------------
def _build_xcol(x_nchw):
    """im2col over the 5x5 tap grid; batch folded into the pixel/lane axis.

    Rows ordered tap*CPAD + ci (each tap padded to 8 sublane-aligned rows),
    columns ordered b*H*W + h*W + w.  Emitted in bf16 for the MXU / DMA.
    """
    n, cin, h, w = x_nchw.shape
    xpad = jnp.pad(x_nchw, ((0, 0), (0, 0), (2, 2), (2, 2)))
    taps = [xpad[:, :, di:di + h, dj:dj + w]
            for di in range(KMAX) for dj in range(KMAX)]
    xcol = jnp.stack(taps, axis=0)                              # (25, N, Cin, H, W)
    xcol = jnp.transpose(xcol, (0, 2, 1, 3, 4))                 # (25, Cin, N, H, W)
    xcol = xcol.reshape(NTAPS, cin, n * h * w)
    xcol = jnp.pad(xcol, ((0, 0), (0, CPAD - cin), (0, 0)))     # per-tap sublane align
    return xcol.reshape(NTAPS * CPAD, n * h * w).astype(jnp.bfloat16)


@jax.jit
def inception_forward(x_nchw, wc, wpool, bias):
    n, cin, h, w = x_nchw.shape
    assert h & (h - 1) == 0 and w & (w - 1) == 0, "power-of-two spatial dims expected"
    cout = wpool.shape[0]
    cols = n * h * w

    xcol = _build_xcol(x_nchw)                                  # (rows, cols) bf16
    rows = xcol.shape[0]

    # Column-tile selection: a tile must span whole images (keeps the in-kernel hh/ww
    # recovery + -inf masks valid) and be lane-dense; its size is capped by a
    # conservative per-generation VMEM budget (v7x has only 64 MiB physical VMEM).
    base = h * w
    while base % 128:
        base *= 2
    try:
        vmem_bytes = pltpu.get_tpu_info().vmem_capacity_bytes
    except Exception:                                           # noqa: BLE001
        vmem_bytes = 64 * 1024 * 1024
    budget = vmem_bytes // 8                # headroom for double-buffering + weights + out
    max_pcols = max(base, (budget // (rows * 2)) // base * base)
    pcols = min(cols, max_pcols)
    while cols % pcols:
        pcols -= base
    assert pcols % (h * w) == 0             # explicit guard (see correctness review)
    g = cols // pcols

    kernel = functools.partial(_inception_kernel, h=h, w=w, cin=cin, cout=cout, cpad=CPAD)

    cost = pl.CostEstimate(
        flops=2 * cols * (3 * cout) * rows          # main MXU matmul
              + 2 * cols * cout * cin               # VPU pool projection
              + 20 * cols * cin + 12 * cols * cout, # pool max/select + bias/sum
        transcendentals=4 * cols * cout,            # logistic per branch
        bytes_accessed=2 * (xcol.size + wc.size) + 4 * (wpool.size + bias.size)
                       + 2 * cout * cols,
    )

    out = pl.pallas_call(
        kernel,
        out_shape=jax.ShapeDtypeStruct((cout, cols), jnp.bfloat16),
        grid=(g,),
        in_specs=[
            pl.BlockSpec((rows, pcols), lambda i: (0, i)),      # im2col slab (lane-dense)
            pl.BlockSpec((3 * cout, rows), lambda i: (0, 0)),   # folded conv weights (bf16)
            pl.BlockSpec((cout, cin), lambda i: (0, 0)),        # folded pool weights (f32)
            pl.BlockSpec((4 * cout, 1), lambda i: (0, 0)),      # folded biases (f32)
        ],
        out_specs=pl.BlockSpec((cout, pcols), lambda i: (0, i)),
        compiler_params=pltpu.CompilerParams(
            dimension_semantics=("parallel",),
            vmem_limit_bytes=32 * 1024 * 1024),
        cost_estimate=cost,
    )(xcol, wc, wpool, bias)                                    # (Cout, N*H*W) bf16

    return out.reshape(cout, n, h, w).transpose(1, 0, 2, 3)     # NCHW


# --------------------------------------------------------------------------
# Deterministic parameters, weight folding (done once, wrapper-side).
# --------------------------------------------------------------------------
def make_branch_params(k_dw, key):
    ks = jax.random.split(key, 8)
    return dict(
        dw_w=jax.random.normal(ks[0], (CIN, k_dw, k_dw), jnp.float32) * 0.3,
        dw_b=jax.random.normal(ks[1], (CIN,), jnp.float32) * 0.1,
        pw_w=jax.random.normal(ks[2], (COUT, CIN), jnp.float32) * 0.3,
        pw_b=jax.random.normal(ks[3], (COUT,), jnp.float32) * 0.1,
        gamma=1.0 + 0.1 * jax.random.normal(ks[4], (COUT,), jnp.float32),
        beta=0.1 * jax.random.normal(ks[5], (COUT,), jnp.float32),
        mean=0.1 * jax.random.normal(ks[6], (COUT,), jnp.float32),
        var=1.0 + 0.5 * jax.random.uniform(ks[7], (COUT,), jnp.float32),
    )


def _bn_scale(bp):
    return bp["gamma"] / jnp.sqrt(bp["var"] + BN_EPS)


def _fold_bias(bp, s):
    return s * (bp["pw_w"] @ bp["dw_b"] + bp["pw_b"] - bp["mean"]) + bp["beta"]


def fold_conv_branch(bp, k):
    """depthwise(k) -> pointwise(1x1) -> BN folded into one (COUT, 25*CPAD) conv weight."""
    s = _bn_scale(bp)
    eff = jnp.einsum("oc,cij->oijc", bp["pw_w"], bp["dw_w"]) * s[:, None, None, None]
    full = jnp.zeros((COUT, KMAX, KMAX, CPAD), jnp.float32)
    lo = (KMAX - k) // 2
    full = full.at[:, lo:lo + k, lo:lo + k, :CIN].set(eff)
    return full.reshape(COUT, NTAPS * CPAD), _fold_bias(bp, s)


def fold_pool_branch(bp):
    """maxpool -> depthwise(1x1) -> pointwise -> BN folded into a (COUT, CIN) matrix."""
    s = _bn_scale(bp)
    a = bp["dw_w"].reshape(CIN)
    return s[:, None] * bp["pw_w"] * a[None, :], _fold_bias(bp, s)


def pack_kernel_params(br1, br3, br5, brp):
    w1, b1 = fold_conv_branch(br1, 1)
    w3, b3 = fold_conv_branch(br3, 3)
    w5, b5 = fold_conv_branch(br5, 5)
    wp, bpb = fold_pool_branch(brp)
    wc = jnp.concatenate([w1, w3, w5], axis=0).astype(jnp.bfloat16)  # (3*COUT, 25*CPAD)
    bias = jnp.concatenate([b1, b3, b5, bpb]).reshape(4 * COUT, 1)
    return wc, wp, bias


# --------------------------------------------------------------------------
# Pure-JAX reference (unfolded f32 params, NCHW like the PyTorch module).
# --------------------------------------------------------------------------
def ref_dsc_bn_silu(x, bp, k):
    cin = x.shape[1]
    pad = (k - 1) // 2
    dw = bp["dw_w"][:, None, :, :]                                 # (Cin, 1, k, k), groups=Cin
    y = lax.conv_general_dilated(
        x, dw, (1, 1), [(pad, pad), (pad, pad)],
        dimension_numbers=("NCHW", "OIHW", "NCHW"),
        feature_group_count=cin) + bp["dw_b"][None, :, None, None]
    pw = bp["pw_w"][:, :, None, None]                              # (Cout, Cin, 1, 1)
    z = lax.conv_general_dilated(
        y, pw, (1, 1), "VALID",
        dimension_numbers=("NCHW", "OIHW", "NCHW")) + bp["pw_b"][None, :, None, None]
    zbn = (bp["gamma"][None, :, None, None]
           * (z - bp["mean"][None, :, None, None])
           / jnp.sqrt(bp["var"][None, :, None, None] + BN_EPS)
           + bp["beta"][None, :, None, None])
    return zbn * jax.nn.sigmoid(zbn)


def ref_forward(x, br1, br3, br5, brp):
    k1 = ref_dsc_bn_silu(x, br1, 1)
    k3 = ref_dsc_bn_silu(x, br3, 3)
    k5 = ref_dsc_bn_silu(x, br5, 5)
    xp = lax.reduce_window(x, -jnp.inf, lax.max, (1, 1, 3, 3), (1, 1, 1, 1),
                           [(0, 0), (0, 0), (1, 1), (1, 1)])
    k7 = ref_dsc_bn_silu(xp, brp, 1)
    return k1 + k3 + k5 + k7


if __name__ == "__main__":
    key = jax.random.PRNGKey(0)
    kx, kk1, kk3, kk5, kkp = jax.random.split(key, 5)

    x = jax.random.normal(kx, (N, CIN, H, W), jnp.float32)         # NCHW, as in PyTorch

    br1 = make_branch_params(1, kk1)
    br3 = make_branch_params(3, kk3)
    br5 = make_branch_params(5, kk5)
    brp = make_branch_params(1, kkp)

    wc, wpool, bias = pack_kernel_params(br1, br3, br5, brp)

    out = inception_forward(x, wc, wpool, bias)
    out = jax.block_until_ready(out)

    ref = ref_forward(x, br1, br3, br5, brp)
    # bf16 MXU operands + bf16 output -> compare at bf16-appropriate tolerance.
    np.testing.assert_allclose(np.asarray(out.astype(jnp.float32)), np.asarray(ref),
                               rtol=2e-2, atol=3e-2)
    print("KERNEL_OK")
</pallas_src>

<mosaic_0001>
module attributes {stable_mosaic.version = 11 : i64} {
  func.func @_inception_kernel(%arg0: i32, %arg1: memref<200x512xbf16, #tpu.memory_space<vmem>>, %arg2: memref<24x200xbf16, #tpu.memory_space<vmem>>, %arg3: memref<8x4xf32, #tpu.memory_space<vmem>>, %arg4: memref<32x1xf32, #tpu.memory_space<vmem>>, %arg5: memref<8x512xbf16, #tpu.memory_space<vmem>>) attributes {dimension_semantics = [#tpu.dimension_semantics<parallel>], iteration_bounds = array<i64: 1>, scalar_prefetch = 0 : i64, scratch_operands = 0 : i64, tpu.core_type = #tpu.core_type<tc>, window_params = [{transform_indices = @transform_0, window_bounds = array<i64: 200, 512>}, {pipeline_mode = #tpu.pipeline_mode<synchronous>, transform_indices = @transform_1, window_bounds = array<i64: 24, 200>}, {pipeline_mode = #tpu.pipeline_mode<synchronous>, transform_indices = @transform_2, window_bounds = array<i64: 8, 4>}, {pipeline_mode = #tpu.pipeline_mode<synchronous>, transform_indices = @transform_3, window_bounds = array<i64: 32, 1>}, {transform_indices = @transform_4, window_bounds = array<i64: 8, 512>}]} {
    %0 = tpu.iota {dimensions = array<i32: 1>} : vector<1x512xi32>
    %c15_i32 = arith.constant 15 : i32
    %1 = vector.broadcast %c15_i32 : i32 to vector<1x512xi32>
    %2 = arith.andi %0, %1 : vector<1x512xi32>
    %c4_i32 = arith.constant 4 : i32
    %3 = vector.broadcast %c4_i32 : i32 to vector<1x512xi32>
    %4 = arith.shrsi %0, %3 : vector<1x512xi32>
    %c15_i32_0 = arith.constant 15 : i32
    %5 = vector.broadcast %c15_i32_0 : i32 to vector<1x512xi32>
    %6 = arith.andi %4, %5 : vector<1x512xi32>
    %c0_i32 = arith.constant 0 : i32
    %7 = vector.broadcast %c0_i32 : i32 to vector<1x512xi32>
    %8 = arith.cmpi eq, %6, %7 : vector<1x512xi32>
    %c15_i32_1 = arith.constant 15 : i32
    %9 = vector.broadcast %c15_i32_1 : i32 to vector<1x512xi32>
    %10 = arith.cmpi eq, %6, %9 : vector<1x512xi32>
    %c0_i32_2 = arith.constant 0 : i32
    %11 = vector.broadcast %c0_i32_2 : i32 to vector<1x512xi32>
    %12 = arith.cmpi eq, %2, %11 : vector<1x512xi32>
    %c15_i32_3 = arith.constant 15 : i32
    %13 = vector.broadcast %c15_i32_3 : i32 to vector<1x512xi32>
    %14 = arith.cmpi eq, %2, %13 : vector<1x512xi32>
    %c96 = arith.constant 96 : index
    %c0 = arith.constant 0 : index
    %15 = vector.load %arg1[%c96, %c0] : memref<200x512xbf16, #tpu.memory_space<vmem>>, vector<4x512xbf16>
    %16 = arith.extf %15 : vector<4x512xbf16> to vector<4x512xf32>
    %17 = arith.ori %8, %12 : vector<1x512xi1>
    %c48 = arith.constant 48 : index
    %c0_4 = arith.constant 0 : index
    %18 = vector.load %arg1[%c48, %c0_4] : memref<200x512xbf16, #tpu.memory_space<vmem>>, vector<4x512xbf16>
    %19 = arith.extf %18 : vector<4x512xbf16> to vector<4x512xf32>
    %cst = arith.constant 0xFF800000 : f32
    %20 = vector.shape_cast %17 : vector<1x512xi1> to vector<1x512xi1>
    %21 = vector.broadcast %20 : vector<1x512xi1> to vector<4x512xi1>
    %22 = vector.broadcast %cst : f32 to vector<4x512xf32>
    %23 = arith.select %21, %22, %19 : vector<4x512xi1>, vector<4x512xf32>
    %24 = arith.maximumf %16, %23 : vector<4x512xf32>
    %c56 = arith.constant 56 : index
    %c0_5 = arith.constant 0 : index
    %25 = vector.load %arg1[%c56, %c0_5] : memref<200x512xbf16, #tpu.memory_space<vmem>>, vector<4x512xbf16>
    %26 = arith.extf %25 : vector<4x512xbf16> to vector<4x512xf32>
    %cst_6 = arith.constant 0xFF800000 : f32
    %27 = vector.shape_cast %8 : vector<1x512xi1> to vector<1x512xi1>
    %28 = vector.broadcast %27 : vector<1x512xi1> to vector<4x512xi1>
    %29 = vector.broadcast %cst_6 : f32 to vector<4x512xf32>
    %30 = arith.select %28, %29, %26 : vector<4x512xi1>, vector<4x512xf32>
    %31 = arith.maximumf %24, %30 : vector<4x512xf32>
    %32 = arith.ori %8, %14 : vector<1x512xi1>
    %c64 = arith.constant 64 : index
    %c0_7 = arith.constant 0 : index
    %33 = vector.load %arg1[%c64, %c0_7] : memref<200x512xbf16, #tpu.memory_space<vmem>>, vector<4x512xbf16>
    %34 = arith.extf %33 : vector<4x512xbf16> to vector<4x512xf32>
    %cst_8 = arith.constant 0xFF800000 : f32
    %35 = vector.shape_cast %32 : vector<1x512xi1> to vector<1x512xi1>
    %36 = vector.broadcast %35 : vector<1x512xi1> to vector<4x512xi1>
    %37 = vector.broadcast %cst_8 : f32 to vector<4x512xf32>
    %38 = arith.select %36, %37, %34 : vector<4x512xi1>, vector<4x512xf32>
    %39 = arith.maximumf %31, %38 : vector<4x512xf32>
    %c88 = arith.constant 88 : index
    %c0_9 = arith.constant 0 : index
    %40 = vector.load %arg1[%c88, %c0_9] : memref<200x512xbf16, #tpu.memory_space<vmem>>, vector<4x512xbf16>
    %41 = arith.extf %40 : vector<4x512xbf16> to vector<4x512xf32>
    %cst_10 = arith.constant 0xFF800000 : f32
    %42 = vector.shape_cast %12 : vector<1x512xi1> to vector<1x512xi1>
    %43 = vector.broadcast %42 : vector<1x512xi1> to vector<4x512xi1>
    %44 = vector.broadcast %cst_10 : f32 to vector<4x512xf32>
    %45 = arith.select %43, %44, %41 : vector<4x512xi1>, vector<4x512xf32>
    %46 = arith.maximumf %39, %45 : vector<4x512xf32>
    %c104 = arith.constant 104 : index
    %c0_11 = arith.constant 0 : index
    %47 = vector.load %arg1[%c104, %c0_11] : memref<200x512xbf16, #tpu.memory_space<vmem>>, vector<4x512xbf16>
    %48 = arith.extf %47 : vector<4x512xbf16> to vector<4x512xf32>
    %cst_12 = arith.constant 0xFF800000 : f32
    %49 = vector.shape_cast %14 : vector<1x512xi1> to vector<1x512xi1>
    %50 = vector.broadcast %49 : vector<1x512xi1> to vector<4x512xi1>
    %51 = vector.broadcast %cst_12 : f32 to vector<4x512xf32>
    %52 = arith.select %50, %51, %48 : vector<4x512xi1>, vector<4x512xf32>
    %53 = arith.maximumf %46, %52 : vector<4x512xf32>
    %54 = arith.ori %10, %12 : vector<1x512xi1>
    %c128 = arith.constant 128 : index
    %c0_13 = arith.constant 0 : index
    %55 = vector.load %arg1[%c128, %c0_13] : memref<200x512xbf16, #tpu.memory_space<vmem>>, vector<4x512xbf16>
    %56 = arith.extf %55 : vector<4x512xbf16> to vector<4x512xf32>
    %cst_14 = arith.constant 0xFF800000 : f32
    %57 = vector.shape_cast %54 : vector<1x512xi1> to vector<1x512xi1>
    %58 = vector.broadcast %57 : vector<1x512xi1> to vector<4x512xi1>
    %59 = vector.broadcast %cst_14 : f32 to vector<4x512xf32>
    %60 = arith.select %58, %59, %56 : vector<4x512xi1>, vector<4x512xf32>
    %61 = arith.maximumf %53, %60 : vector<4x512xf32>
    %c136 = arith.constant 136 : index
    %c0_15 = arith.constant 0 : index
    %62 = vector.load %arg1[%c136, %c0_15] : memref<200x512xbf16, #tpu.memory_space<vmem>>, vector<4x512xbf16>
    %63 = arith.extf %62 : vector<4x512xbf16> to vector<4x512xf32>
    %cst_16 = arith.constant 0xFF800000 : f32
    %64 = vector.shape_cast %10 : vector<1x512xi1> to vector<1x512xi1>
    %65 = vector.broadcast %64 : vector<1x512xi1> to vector<4x512xi1>
    %66 = vector.broadcast %cst_16 : f32 to vector<4x512xf32>
    %67 = arith.select %65, %66, %63 : vector<4x512xi1>, vector<4x512xf32>
    %68 = arith.maximumf %61, %67 : vector<4x512xf32>
    %69 = arith.ori %10, %14 : vector<1x512xi1>
    %c144 = arith.constant 144 : index
    %c0_17 = arith.constant 0 : index
    %70 = vector.load %arg1[%c144, %c0_17] : memref<200x512xbf16, #tpu.memory_space<vmem>>, vector<4x512xbf16>
    %71 = arith.extf %70 : vector<4x512xbf16> to vector<4x512xf32>
    %cst_18 = arith.constant 0xFF800000 : f32
    %72 = vector.shape_cast %69 : vector<1x512xi1> to vector<1x512xi1>
    %73 = vector.broadcast %72 : vector<1x512xi1> to vector<4x512xi1>
    %74 = vector.broadcast %cst_18 : f32 to vector<4x512xf32>
    %75 = arith.select %73, %74, %71 : vector<4x512xi1>, vector<4x512xf32>
    %76 = arith.maximumf %68, %75 : vector<4x512xf32>
    %c0_19 = arith.constant 0 : index
    %c0_20 = arith.constant 0 : index
    %77 = vector.load %arg2[%c0_19, %c0_20] : memref<24x200xbf16, #tpu.memory_space<vmem>>, vector<24x200xbf16>
    %c0_21 = arith.constant 0 : index
    %c0_22 = arith.constant 0 : index
    %78 = vector.load %arg1[%c0_21, %c0_22] : memref<200x512xbf16, #tpu.memory_space<vmem>>, vector<200x512xbf16>
    %cst_23 = arith.constant dense<0.000000e+00> : vector<24x512xf32>
    %79 = tpu.matmul %77, %78, %cst_23 {dimension_numbers = #tpu.dot_dimension_numbers<[1], [0], [0], [1], [0, 0, 1, 1], [], []>} : vector<24x200xbf16>, vector<200x512xbf16>, vector<24x512xf32> -> vector<24x512xf32>
    %c0_24 = arith.constant 0 : index
    %c0_25 = arith.constant 0 : index
    %80 = vector.load %arg3[%c0_24, %c0_25] : memref<8x4xf32, #tpu.memory_space<vmem>>, vector<8x4xf32>
    %81 = vector.extract_strided_slice %80 {offsets = [0, 0], sizes = [8, 1], strides = [1, 1]} : vector<8x4xf32> to vector<8x1xf32>
    %82 = vector.extract_strided_slice %76 {offsets = [0, 0], sizes = [1, 512], strides = [1, 1]} : vector<4x512xf32> to vector<1x512xf32>
    %83 = vector.broadcast %81 : vector<8x1xf32> to vector<8x512xf32>
    %84 = vector.broadcast %82 : vector<1x512xf32> to vector<8x512xf32>
    %85 = arith.mulf %83, %84 : vector<8x512xf32>
    %86 = vector.extract_strided_slice %80 {offsets = [0, 1], sizes = [8, 1], strides = [1, 1]} : vector<8x4xf32> to vector<8x1xf32>
    %87 = vector.extract_strided_slice %76 {offsets = [1, 0], sizes = [1, 512], strides = [1, 1]} : vector<4x512xf32> to vector<1x512xf32>
    %88 = vector.broadcast %86 : vector<8x1xf32> to vector<8x512xf32>
    %89 = vector.broadcast %87 : vector<1x512xf32> to vector<8x512xf32>
    %90 = arith.mulf %88, %89 : vector<8x512xf32>
    %91 = arith.addf %85, %90 : vector<8x512xf32>
    %92 = vector.extract_strided_slice %80 {offsets = [0, 2], sizes = [8, 1], strides = [1, 1]} : vector<8x4xf32> to vector<8x1xf32>
    %93 = vector.extract_strided_slice %76 {offsets = [2, 0], sizes = [1, 512], strides = [1, 1]} : vector<4x512xf32> to vector<1x512xf32>
    %94 = vector.broadcast %92 : vector<8x1xf32> to vector<8x512xf32>
    %95 = vector.broadcast %93 : vector<1x512xf32> to vector<8x512xf32>
    %96 = arith.mulf %94, %95 : vector<8x512xf32>
    %97 = arith.addf %91, %96 : vector<8x512xf32>
    %98 = vector.extract_strided_slice %80 {offsets = [0, 3], sizes = [8, 1], strides = [1, 1]} : vector<8x4xf32> to vector<8x1xf32>
    %99 = vector.extract_strided_slice %76 {offsets = [3, 0], sizes = [1, 512], strides = [1, 1]} : vector<4x512xf32> to vector<1x512xf32>
    %100 = vector.broadcast %98 : vector<8x1xf32> to vector<8x512xf32>
    %101 = vector.broadcast %99 : vector<1x512xf32> to vector<8x512xf32>
    %102 = arith.mulf %100, %101 : vector<8x512xf32>
    %103 = arith.addf %97, %102 : vector<8x512xf32>
    %c0_26 = arith.constant 0 : index
    %c0_27 = arith.constant 0 : index
    %104 = vector.load %arg4[%c0_26, %c0_27] : memref<32x1xf32, #tpu.memory_space<vmem>>, vector<32x1xf32>
    %105 = vector.extract_strided_slice %79 {offsets = [0, 0], sizes = [8, 512], strides = [1, 1]} : vector<24x512xf32> to vector<8x512xf32>
    %106 = vector.extract_strided_slice %104 {offsets = [0, 0], sizes = [8, 1], strides = [1, 1]} : vector<32x1xf32> to vector<8x1xf32>
    %107 = vector.broadcast %106 : vector<8x1xf32> to vector<8x512xf32>
    %108 = arith.addf %105, %107 : vector<8x512xf32>
    %109 = arith.negf %108 : vector<8x512xf32>
    %110 = math.exp %109 : vector<8x512xf32>
    %cst_28 = arith.constant 1.000000e+00 : f32
    %111 = vector.broadcast %cst_28 : f32 to vector<8x512xf32>
    %112 = arith.addf %111, %110 : vector<8x512xf32>
    %113 = arith.divf %111, %112 : vector<8x512xf32>
    %114 = arith.mulf %108, %113 : vector<8x512xf32>
    %115 = vector.extract_strided_slice %79 {offsets = [8, 0], sizes = [8, 512], strides = [1, 1]} : vector<24x512xf32> to vector<8x512xf32>
    %116 = vector.extract_strided_slice %104 {offsets = [8, 0], sizes = [8, 1], strides = [1, 1]} : vector<32x1xf32> to vector<8x1xf32>
    %117 = vector.broadcast %116 : vector<8x1xf32> to vector<8x512xf32>
    %118 = arith.addf %115, %117 : vector<8x512xf32>
    %119 = arith.negf %118 : vector<8x512xf32>
    %120 = math.exp %119 : vector<8x512xf32>
    %cst_29 = arith.constant 1.000000e+00 : f32
    %121 = vector.broadcast %cst_29 : f32 to vector<8x512xf32>
    %122 = arith.addf %121, %120 : vector<8x512xf32>
    %123 = arith.divf %121, %122 : vector<8x512xf32>
    %124 = arith.mulf %118, %123 : vector<8x512xf32>
    %125 = arith.addf %114, %124 : vector<8x512xf32>
    %126 = vector.extract_strided_slice %79 {offsets = [16, 0], sizes = [8, 512], strides = [1, 1]} : vector<24x512xf32> to vector<8x512xf32>
    %127 = vector.extract_strided_slice %104 {offsets = [16, 0], sizes = [8, 1], strides = [1, 1]} : vector<32x1xf32> to vector<8x1xf32>
    %128 = vector.broadcast %127 : vector<8x1xf32> to vector<8x512xf32>
    %129 = arith.addf %126, %128 : vector<8x512xf32>
    %130 = arith.negf %129 : vector<8x512xf32>
    %131 = math.exp %130 : vector<8x512xf32>
    %cst_30 = arith.constant 1.000000e+00 : f32
    %132 = vector.broadcast %cst_30 : f32 to vector<8x512xf32>
    %133 = arith.addf %132, %131 : vector<8x512xf32>
    %134 = arith.divf %132, %133 : vector<8x512xf32>
    %135 = arith.mulf %129, %134 : vector<8x512xf32>
    %136 = arith.addf %125, %135 : vector<8x512xf32>
    %137 = vector.extract_strided_slice %104 {offsets = [24, 0], sizes = [8, 1], strides = [1, 1]} : vector<32x1xf32> to vector<8x1xf32>
    %138 = vector.broadcast %137 : vector<8x1xf32> to vector<8x512xf32>
    %139 = arith.addf %103, %138 : vector<8x512xf32>
    %140 = arith.negf %139 : vector<8x512xf32>
    %141 = math.exp %140 : vector<8x512xf32>
    %cst_31 = arith.constant 1.000000e+00 : f32
    %142 = vector.broadcast %cst_31 : f32 to vector<8x512xf32>
    %143 = arith.addf %142, %141 : vector<8x512xf32>
    %144 = arith.divf %142, %143 : vector<8x512xf32>
    %145 = arith.mulf %139, %144 : vector<8x512xf32>
    %146 = arith.addf %136, %145 : vector<8x512xf32>
    %147 = arith.truncf %146 : vector<8x512xf32> to vector<8x512xbf16>
    %c0_32 = arith.constant 0 : index
    %c0_33 = arith.constant 0 : index
    %148 = vector.load %arg5[%c0_32, %c0_33] : memref<8x512xbf16, #tpu.memory_space<vmem>>, vector<8x512xbf16>
    tpu.vector_store %arg5[%c0_32, %c0_33], %147 {strides = array<i32>} : memref<8x512xbf16, #tpu.memory_space<vmem>>, vector<8x512xbf16>,
    return
  }
  func.func @transform_0(%arg0: i32) -> (i32, i32) {
    %c0_i32 = arith.constant 0 : i32
    %c0_i32_0 = arith.constant 0 : i32
    return %c0_i32, %arg0 : i32, i32
  }
  func.func @transform_1(%arg0: i32) -> (i32, i32) {
    %c0_i32 = arith.constant 0 : i32
    %c0_i32_0 = arith.constant 0 : i32
    %c0_i32_1 = arith.constant 0 : i32
    return %c0_i32, %c0_i32_0 : i32, i32
  }
  func.func @transform_2(%arg0: i32) -> (i32, i32) {
    %c0_i32 = arith.constant 0 : i32
    %c0_i32_0 = arith.constant 0 : i32
    %c0_i32_1 = arith.constant 0 : i32
    return %c0_i32, %c0_i32_0 : i32, i32
  }
  func.func @transform_3(%arg0: i32) -> (i32, i32) {
    %c0_i32 = arith.constant 0 : i32
    %c0_i32_0 = arith.constant 0 : i32
    %c0_i32_1 = arith.constant 0 : i32
    return %c0_i32, %c0_i32_0 : i32, i32
  }
  func.func @transform_4(%arg0: i32) -> (i32, i32) {
    %c0_i32 = arith.constant 0 : i32
    %c0_i32_0 = arith.constant 0 : i32
    return %c0_i32, %arg0 : i32, i32
  }
}

</mosaic_0001>

<bundles_post_ra>
// kernel: inception_forward.1
= control target key start
LH: loop header
LB: loop body
LE: loop exit
PB: predicated region body
PF: predicated region fallthrough
CT: control target
= control target key end

     0   :  { %v1221_v1 = vmov 2   ;;  %v1222_v2 = vmov 1   ;;  %vm567_vm0 = vcmask 588800   ;;  %v1223_v46 = vmov 3   ;;  %s1771_s0 = inlined_call_operand.vmem [shape: bf16[200,512], index: 0, kind: input, shape index: {}]   ;;  %s1772_s1 = inlined_call_operand.vmem [shape: bf16[24,200], index: 1, kind: input, shape index: {}]   ;;  %s1773_s2 = inlined_call_operand.vmem [shape: f32[8,4], index: 2, kind: input, shape index: {}]   ;;  %s1774_s3 = inlined_call_operand.vmem [shape: f32[32,1], index: 3, kind: input, shape index: {}]   ;;  %s1775_s4 = inlined_call_operand.vmem [shape: bf16[8,512], index: 4, kind: output, shape index: {}]  }
   0x1   :  { %v1076_v0 = vld [vmem:[%s1771_s0 + $0x4] ss:$16 sps:$4 sm:$0xff]   ;;  %1073 = vset.pattern.permute.xlu1 %v1221_v1  ;;  %1071 = vset.pattern.permute.xlu0 %v1222_v2  ;;  %v1078_v3 = vld [vmem:[%s1771_s0 + $0xc] ss:$16 sps:$4 sm:$0xff]   ;;  %v1080_v4 = vld [vmem:[%s1771_s0] ss:$16 sps:$4 sm:$0xff]  }
   0x2   :  { %587 = vmatprep.subr.bf16.mxu0 %v1076_v0  ;;  %v1081_v5 = vld [vmem:[%s1771_s0 + $0x8] ss:$16 sps:$4 sm:$0xff]   ;;  %638 = vmatprep.subr.bf16.mxu1 %v1078_v3  ;;  %v1082_v6 = vld [vmem:[%s1771_s0 + $0x24] ss:$16 sps:$4 sm:$0xff]   ;;  %v1084_v7 = vld [vmem:[%s1771_s0 + $0x2c] ss:$16 sps:$4 sm:$0xff]  }
   0x3   :  { %588 = vmatpush1.bf16.msra.mxu0 %v1080_v4  ;;  %639 = vmatpush1.bf16.msra.mxu1 %v1081_v5  ;;  %v1086_v8 = vld [vmem:[%s1771_s0 + $0x20] ss:$16 sps:$4 sm:$0xff]   ;;  %v1087_v9 = vld [vmem:[%s1771_s0 + $0x28] ss:$16 sps:$4 sm:$0xff]   ;;  %v1088_v10 = vld [vmem:[%s1771_s0 + $0x44] ss:$16 sps:$4 sm:$0xff]  }
   0x4   :  { %589 = vmatprep.subr.bf16.mxu0 %v1082_v6  ;;  %640 = vmatprep.subr.bf16.mxu1 %v1084_v7  ;;  %v1090_v11 = vld [vmem:[%s1771_s0 + $0x4c] ss:$16 sps:$4 sm:$0xff]   ;;  %v1092_v12 = vld [vmem:[%s1771_s0 + $0x40] ss:$16 sps:$4 sm:$0xff]   ;;  %v1093_v13 = vld [vmem:[%s1771_s0 + $0x48] ss:$16 sps:$4 sm:$0xff]   ;;  %v18_v6 = vlaneseq }
   0x5   :  { %v1094_v14 = vld [vmem:[%s1771_s0 + $0x64] ss:$16 sps:$4 sm:$0xff]   ;;  %v1096_v15 = vld [vmem:[%s1771_s0 + $0x6c] ss:$16 sps:$4 sm:$0xff]   ;;  %v1098_v16 = vld [vmem:[%s1771_s0 + $0x60] ss:$16 sps:$4 sm:$0xff]  }
   0x6   :  { %v1099_v17 = vld [vmem:[%s1771_s0 + $0x68] ss:$16 sps:$4 sm:$0xff]   ;;  %v1100_v18 = vld [vmem:[%s1771_s0 + $0x84] ss:$16 sps:$4 sm:$0xff]   ;;  %v1102_v19 = vld [vmem:[%s1771_s0 + $0x8c] ss:$16 sps:$4 sm:$0xff]  }
   0x7   :  { %590 = vmatpush1.bf16.msra.mxu0 %v1086_v8  ;;  %641 = vmatpush1.bf16.msra.mxu1 %v1087_v9  ;;  %v1104_v20 = vld [vmem:[%s1771_s0 + $0x80] ss:$16 sps:$4 sm:$0xff]   ;;  %v1105_v21 = vld [vmem:[%s1771_s0 + $0x88] ss:$16 sps:$4 sm:$0xff]   ;;  %v1106_v22 = vld [vmem:[%s1771_s0 + $0xa4] ss:$16 sps:$4 sm:$0xff]  }
   0x8   :  { %591 = vmatprep.subr.bf16.mxu0 %v1088_v10  ;;  %642 = vmatprep.subr.bf16.mxu1 %v1090_v11  ;;  %v1108_v23 = vld [vmem:[%s1771_s0 + $0xac] ss:$16 sps:$4 sm:$0xff]   ;;  %v1110_v24 = vld [vmem:[%s1771_s0 + $0xa0] ss:$16 sps:$4 sm:$0xff]   ;;  %v1111_v25 = vld [vmem:[%s1771_s0 + $0xa8] ss:$16 sps:$4 sm:$0xff]  }
   0x9   :  { %v1112_v26 = vld [vmem:[%s1771_s0 + $0xc4] ss:$16 sps:$4 sm:$0xff]   ;;  %v1114_v27 = vld [vmem:[%s1771_s0 + $0xcc] ss:$16 sps:$4 sm:$0xff]   ;;  %v1116_v28 = vld [vmem:[%s1771_s0 + $0xc0] ss:$16 sps:$4 sm:$0xff]  }
   0xa   :  { %v1117_v29 = vld [vmem:[%s1771_s0 + $0xc8] ss:$16 sps:$4 sm:$0xff]   ;;  %v1118_v30 = vld [vmem:[%s1771_s0 + $0xe4] ss:$16 sps:$4 sm:$0xff]   ;;  %v1120_v31 = vld [vmem:[%s1771_s0 + $0xec] ss:$16 sps:$4 sm:$0xff]  }
   0xb   :  { %592 = vmatpush1.bf16.msra.mxu0 %v1092_v12  ;;  %643 = vmatpush1.bf16.msra.mxu1 %v1093_v13  ;;  %v1122_v32 = vld [vmem:[%s1771_s0 + $0xe0] ss:$16 sps:$4 sm:$0xff]   ;;  %v1123_v33 = vld [vmem:[%s1771_s0 + $0xe8] ss:$16 sps:$4 sm:$0xff]   ;;  %v1124_v34 = vld [vmem:[%s1771_s0 + $0x104] ss:$16 sps:$4 sm:$0xff]  }
   0xc   :  { %593 = vmatprep.subr.bf16.mxu0 %v1094_v14  ;;  %644 = vmatprep.subr.bf16.mxu1 %v1096_v15  ;;  %v1126_v35 = vld [vmem:[%s1771_s0 + $0x10c] ss:$16 sps:$4 sm:$0xff]   ;;  %v1128_v36 = vld [vmem:[%s1771_s0 + $0x100] ss:$16 sps:$4 sm:$0xff]   ;;  %v1129_v37 = vld [vmem:[%s1771_s0 + $0x108] ss:$16 sps:$4 sm:$0xff]  }
   0xd   :  { %v1130_v38 = vld [vmem:[%s1771_s0 + $0x124] ss:$16 sps:$4 sm:$0xff]   ;;  %v1132_v39 = vld [vmem:[%s1771_s0 + $0x12c] ss:$16 sps:$4 sm:$0xff]   ;;  %v1134_v42 = vld [vmem:[%s1771_s0 + $0x120] ss:$16 sps:$4 sm:$0xff]  }
   0xe   :  { %v1154_v40 = vld [vmem:[%s1772_s1 + $0x4] ss:$8 sps:$4 sm:$0xff]   ;;  %v1135_v43 = vld [vmem:[%s1771_s0 + $0x128] ss:$16 sps:$4 sm:$0xff]   ;;  %v1224_v47 = vmov 0   ;;  %vm574_vm1 = vcmask 1043456  }
   0xf   :  { %594 = vmatpush1.bf16.msra.mxu0 %v1098_v16  ;;  %645 = vmatpush1.bf16.msra.mxu1 %v1099_v17  ;;  %v689_v41 = vld [vmem:[%s1773_s2] sm:$0xff]  ;;  %v1138_v45 = vld [vmem:[%s1771_s0 + $0x14c] ss:$16 sps:$4 sm:$0xff]   ;;  %v1141_v49 = vld [vmem:[%s1771_s0 + $0x148] ss:$16 sps:$4 sm:$0xff]   ;;  %v19_v7 = vand.u32 127, %v18_v6 }
  0x10   :  { %595 = vmatprep.subr.bf16.mxu0 %v1100_v18  ;;  %646 = vmatprep.subr.bf16.mxu1 %v1102_v19  ;;  %v1136_v44 = vld [vmem:[%s1771_s0 + $0x144] ss:$16 sps:$4 sm:$0xff]   ;;  %v1140_v48 = vld [vmem:[%s1771_s0 + $0x140] ss:$16 sps:$4 sm:$0xff]   ;;  %v1144_v51 = vld [vmem:[%s1771_s0 + $0x16c] ss:$16 sps:$4 sm:$0xff]  }
  0x11   :  { %744 = vperm.xlu1 %1073, %v689_v41   ;;  %716 = vperm.xlu0 %1071, %v689_v41   ;;  %v1142_v50 = vld [vmem:[%s1771_s0 + $0x164] ss:$16 sps:$4 sm:$0xff]   ;;  %v301_v53 = vld [vmem:[%s1771_s0 + $0x188] sm:$0xff]  ;;  %v1146_v55 = vld [vmem:[%s1771_s0 + $0x160] ss:$16 sps:$4 sm:$0xff]   ;;  %v20_v8 = vadd.s32 128, %v19_v7 }
  0x12   :  { %1042 = vmatprep.mubr.msk.bf16.mxu0 %vm567_vm0, %v1154_v40  ;;  %1045 = vmatprep.mubr.msk.bf16.mxu1 %vm567_vm0, %v1154_v40  ;;  %v300_v52 = vld [vmem:[%s1771_s0 + $0x180] sm:$0xff]  ;;  %v800_v54 = vld [vmem:[%s1774_s3 + $0x8] sm:$0xff]  ;;  %v1040_v59 = vcombine.high %v301_v53, %v301_v53  ;;  %v1039_v61 = vcombine.low %v301_v53, %v301_v53  ;;  %v801_v62 = vld [vmem:[%s1774_s3 + $0x10] sm:$0xff]  ;;  %v21_v9 = vadd.s32 256, %v19_v7  ;;  %v27_v10 = vshra.s32 %v19_v7, 4 }
  0x13   :  { %596 = vmatpush1.bf16.msra.mxu0 %v1104_v20  ;;  %647 = vmatpush1.bf16.msra.mxu1 %v1105_v21  ;;  %v1147_v56 = vld [vmem:[%s1771_s0 + $0x168] ss:$16 sps:$4 sm:$0xff]   ;;  %v1038_v57 = vcombine.high %v300_v52, %v300_v52  ;;  %v799_v58 = vld [vmem:[%s1774_s3] sm:$0xff]  ;;  %v1037_v60 = vcombine.low %v300_v52, %v300_v52  ;;  %v251_v1 = vld [vmem:[%s1772_s1 + $0x10] sm:$0xff]  ;;  %v28_v11 = vshra.s32 %v20_v8, 4  ;;  %v23_v13 = vand.u32 15, %v19_v7 }
  0x14   :  { %597 = vmatprep.subr.bf16.mxu0 %v1106_v22  ;;  %648 = vmatprep.subr.bf16.mxu1 %v1108_v23  ;;  %v582_v0 = vsel %vm574_vm1, %v1039_v61, 0  ;;  %v1152_v2 = vld [vmem:[%s1772_s1] ss:$8 sps:$4 sm:$0xff]   ;;  %v988_v3 = vcombine.high %v251_v1, %v251_v1  ;;  %v802_v4 = vld [vmem:[%s1774_s3 + $0x18] sm:$0xff]  ;;  %v987_v5 = vcombine.low %v251_v1, %v251_v1  ;;  %v29_v12 = vshra.s32 %v21_v9, 4 }
  0x15   :  { %1074 = vset.pattern.permute.xlu1 %v1223_v46  ;;  %1072 = vset.pattern.permute.xlu0 %v1224_v47  ;;  %v576_v63 = vsel %vm574_vm1, %v1037_v60, 0  ;;  %v1429_v14 = vand.u32 15, %v27_v10  ;;  %v24_v15 = vand.u32 15, %v20_v8  ;;  %v1431_v16 = vand.u32 15, %v28_v11  ;;  %v61_v19 = vld [vmem:[%s1771_s0 + $0x60] sm:$0x33] }
  0x16   :  { %772 = vperm.xlu1 %1074, %v689_v41   ;;  %692 = vperm.xlu0 %1072, %v689_v41   ;;  %v25_v17 = vand.u32 15, %v21_v9  ;;  %v1433_v18 = vand.u32 15, %v29_v12  ;;  %vm1439_vm3 = vcmp.eq.s32.totalorder %v23_v13, 0  ;;  %v1443_v21 = vadd.s32 384, %v19_v7  ;;  %v1453_v23 = vld [vmem:[%s1771_s0 + $0x68] sm:$0x33] }
  0x17   :  { %598 = vmatpush1.bf16.msra.mxu0 %v1110_v24  ;;  %649 = vmatpush1.bf16.msra.mxu1 %v1111_v25  ;;  %vm35_vm2 = vcmp.eq.s32.totalorder %v1429_v14, 0  ;;  %vm36_vm4 = vcmp.eq.s32.totalorder %v1431_v16, 0  ;;  %vm1446_vm5 = vcmp.eq.s32.totalorder %v24_v15, 0  ;;  %v51_v25 = vld [vmem:[%s1771_s0 + $0xc0] sm:$0x33]  ;;  %vm1494_vm11 = vcmp.eq.s32.totalorder %v23_v13, 15 }
  0x18   :  { %599 = vmatprep.subr.bf16.mxu0 %v1112_v26  ;;  %650 = vmatprep.subr.bf16.mxu1 %v1114_v27  ;;  %vm37_vm6 = vcmp.eq.s32.totalorder %v1433_v18, 0  ;;  %vm1456_vm7 = vcmp.eq.s32.totalorder %v25_v17, 0  ;;  %v63_v26 = vunpack.c.l.bf16 %v61_v19  ;;  %vm57_vm8 = vmor %vm35_vm2, %vm1439_vm3  ;;  %v64_v27 = vunpack.c.h.bf16 %v61_v19  ;;  %v109_v40 = vld [vmem:[%s1771_s0 + $0x80] sm:$0x33]  ;;  %v1540_v60 = vld [vmem:[%s1771_s0 + $0xb8] sm:$0x33] }
  0x19   :  { %vm58_vm9 = vmor %vm36_vm4, %vm1446_vm5  ;;  %vm1501_vm12 = vcmp.eq.s32.totalorder %v24_v15, 15  ;;  %vm1510_vm13 = vcmp.eq.s32.totalorder %v25_v17, 15  ;;  %v26_v52 = vand.u32 15, %v1443_v21  ;;  %v135_v7 = vunpack.c.l.bf16 %v1540_v60  ;;  %v1555_v10 = vld [vmem:[%s1771_s0 + $0xd8] sm:$0x33] }
  0x1a   :  { %1075 = vset.pattern.permute.xlu1 %v1224_v47  ;;  %842 = vperm.xlu0 %1072, %v800_v54   ;;  %vm59_vm10 = vmor %vm37_vm6, %vm1456_vm7  ;;  %v1508_v47 = vld [vmem:[%s1771_s0 + $0x88] sm:$0x33]  ;;  %v66_v8 = vunpack.c.h.bf16 %v1453_v23 }
  0x1b   :  { %600 = vmatpush1.bf16.msra.mxu0 %v1116_v28  ;;  %651 = vmatpush1.bf16.msra.mxu1 %v1117_v29  ;;  %v83_v28 = vld [vmem:[%s1771_s0 + $0x70] sm:$0x33]  ;;  %v1477_v29 = vld [vmem:[%s1771_s0 + $0xc8] sm:$0x33]  ;;  %vm105_vm14 = vmor %vm35_vm2, %vm1494_vm11 }
  0x1c   :  { %601 = vmatprep.subr.bf16.mxu0 %v1118_v30  ;;  %652 = vmatprep.subr.bf16.mxu1 %v1120_v31  ;;  %v65_v30 = vunpack.c.l.bf16 %v1453_v23  ;;  %v30_v31 = vshra.s32 %v1443_v21, 4  ;;  %vm106_vm15 = vmor %vm36_vm4, %vm1501_vm12  ;;  %v179_v21 = vld [vmem:[%s1771_s0 + $0x100] sm:$0x33]  ;;  %v56_v23 = vunpack.c.h.bf16 %v1477_v29 }
  0x1d   :  { %805 = vperm.xlu1 %1075, %v799_v58   ;;  %v113_v58 = vunpack.c.l.bf16 %v1508_v47 }
  0x1f   :  { %602 = vmatpush1.bf16.msra.mxu0 %v1122_v32  ;;  %653 = vmatpush1.bf16.msra.mxu1 %v1123_v33  ;;  %v53_v32 = vunpack.c.l.bf16 %v51_v25  ;;  %v1488_v33 = vld [vmem:[%s1771_s0 + $0x78] sm:$0x33] }
  0x20   :  { %603 = vmatprep.subr.bf16.mxu0 %v1124_v34  ;;  %654 = vmatprep.subr.bf16.mxu1 %v1126_v35  ;;  %v54_v34 = vunpack.c.h.bf16 %v51_v25  ;;  %v75_v35 = vsel %vm57_vm8, -inf, %v63_v26  ;;  %v147_v25 = vsel %vm1456_vm7, -inf, %v135_v7  ;;  %v157_v26 = vunpack.c.l.bf16 %v1555_v10 }
  0x21   :  { %883 = vperm.xlu1 %1075, %v801_v62   ;;  %v79_v46 = vmax.f32 %v53_v32, %v75_v35  ;;  %vm40_vm8 = vcmp.eq.s32.totalorder %v1431_v16, 15  ;;  %v158_v7 = vunpack.c.h.bf16 %v1555_v10 }
  0x23   :  { %604 = vmatpush1.bf16.msra.mxu0 %v1128_v36  ;;  %655 = vmatpush1.bf16.msra.mxu1 %v1129_v37  ;;  %v85_v36 = vunpack.c.l.bf16 %v83_v28  ;;  %v55_v37 = vunpack.c.l.bf16 %v1477_v29 }
  0x24   :  { %605 = vmatprep.subr.bf16.mxu0 %v1130_v38  ;;  %656 = vmatprep.subr.bf16.mxu1 %v1132_v39  ;;  %v76_v38 = vsel %vm58_vm9, -inf, %v64_v27  ;;  %v86_v39 = vunpack.c.h.bf16 %v83_v28  ;;  %v88_v28 = vunpack.c.h.bf16 %v1488_v33  ;;  %vm41_vm9 = vcmp.eq.s32.totalorder %v1433_v18, 15 }
  0x25   :  { %924 = vperm.xlu1 %1075, %v802_v4   ;;  %v153_v4 = vld [vmem:[%s1771_s0 + $0xd0] sm:$0x33] }
  0x26   :  { %v98_v54 = vsel %vm36_vm4, -inf, %v86_v39  ;;  %v155_v13 = vunpack.c.l.bf16 %v153_v4  ;;  %v156_v19 = vunpack.c.h.bf16 %v153_v4  ;;  %v201_v39 = vld [vmem:[%s1771_s0 + $0x110] sm:$0x33] }
  0x27   :  { %606 = vmatpush1.bf16.msra.mxu0 %v1134_v42  ;;  %657 = vmatpush1.bf16.msra.mxu1 %v1135_v43  ;;  %v77_v42 = vsel %vm59_vm10, -inf, %v65_v30  ;;  %v87_v43 = vunpack.c.l.bf16 %v1488_v33  ;;  %vm1583_vm10 = vcmp.eq.s32.totalorder %v26_v52, 15 }
  0x28   :  { %607 = vmatprep.subr.bf16.mxu0 %v1136_v44  ;;  %658 = vmatprep.subr.bf16.mxu1 %v1138_v45  ;;  %v1499_v44 = vand.u32 15, %v30_v31  ;;  %v81_v53 = vmax.f32 %v55_v37, %v77_v42  ;;  %v1578_v31 = vld [vmem:[%s1771_s0 + $0x108] sm:$0x33]  ;;  %v167_v29 = vsel %vm1494_vm11, -inf, %v155_v13  ;;  %v168_v37 = vsel %vm1501_vm12, -inf, %v156_v19 }
  0x29   :  { %v183_v42 = vunpack.c.l.bf16 %v1578_v31 }
  0x2b   :  { %608 = vmatpush1.bf16.msra.mxu0 %v1140_v48  ;;  %659 = vmatpush1.bf16.msra.mxu1 %v1141_v49  ;;  %v80_v49 = vmax.f32 %v54_v34, %v76_v38  ;;  %v181_v34 = vunpack.c.l.bf16 %v179_v21  ;;  %v182_v38 = vunpack.c.h.bf16 %v179_v21  ;;  %v170_v48 = vsel %vm1583_vm10, -inf, %v158_v7 }
  0x2c   :  { %609 = vmatprep.subr.bf16.mxu0 %v1142_v50  ;;  %660 = vmatprep.subr.bf16.mxu1 %v1144_v51  ;;  %v97_v50 = vsel %vm35_vm2, -inf, %v85_v36  ;;  %v111_v51 = vunpack.c.l.bf16 %v109_v40  ;;  %vm1543_vm2 = vcmp.eq.s32.totalorder %v26_v52, 0 }
  0x2d   :  { %v102_v61 = vmax.f32 %v80_v49, %v98_v54  ;;  %v1617_v49 = vld [vmem:[%s1771_s0 + $0x118] sm:$0x33]  ;;  %v204_v54 = vunpack.c.h.bf16 %v201_v39 }
  0x2e   :  { %v123_v62 = vsel %vm105_vm14, -inf, %v111_v51  ;;  %v203_v51 = vunpack.c.l.bf16 %v201_v39 }
  0x2f   :  { %610 = vmatpush1.bf16.msra.mxu0 %v1146_v55  ;;  %661 = vmatpush1.bf16.msra.mxu1 %v1147_v56  ;;  %v112_v55 = vunpack.c.h.bf16 %v109_v40  ;;  %v131_v56 = vld [vmem:[%s1771_s0 + $0xb0] sm:$0x33]  ;;  %v169_v40 = vsel %vm1510_vm13, -inf, %v157_v26 }
  0x30   :  { %1041 = vmatprep.subr.msk.bf16.mxu0 %vm574_vm1, %v1038_v57  ;;  %1044 = vmatprep.subr.msk.bf16.mxu1 %vm574_vm1, %v1040_v59  ;;  %v99_v57 = vsel %vm37_vm6, -inf, %v87_v43  ;;  %v101_v59 = vmax.f32 %v79_v46, %v97_v50  ;;  %vm38_vm1 = vcmp.eq.s32.totalorder %v1499_v44, 0  ;;  %v114_v46 = vunpack.c.h.bf16 %v1508_v47  ;;  %v227_v47 = vld [vmem:[%s1771_s0 + $0x120] sm:$0x33] }
  0x31   :  { %v103_v1 = vmax.f32 %v81_v53, %v99_v57  ;;  %vm60_vm4 = vmor %vm38_vm1, %vm1543_vm2  ;;  %v100_v43 = vsel %vm38_vm1, -inf, %v88_v28  ;;  %v205_v57 = vunpack.c.l.bf16 %v1617_v49  ;;  %v230_v4 = vunpack.c.h.bf16 %v227_v47 }
  0x32   :  { %v127_v9 = vmax.f32 %v101_v59, %v123_v62  ;;  %v78_v27 = vsel %vm60_vm4, -inf, %v66_v8  ;;  %v136_v59 = vunpack.c.h.bf16 %v1540_v60  ;;  %v1633_v62 = vld [vmem:[%s1771_s0 + $0x128] sm:$0x33]  ;;  %v216_v60 = vsel %vm40_vm8, -inf, %v204_v54 }
  0x33   :  { %612 = vmatpush1.bf16.msra.mxu0 %v576_v63  ;;  %663 = vmatpush1.bf16.msra.mxu1 %v582_v0  ;;  %v133_v63 = vunpack.c.l.bf16 %v131_v56  ;;  %v82_v20 = vmax.f32 %v56_v23, %v78_v27  ;;  %v217_v8 = vsel %vm41_vm9, -inf, %v205_v57  ;;  %v231_v41 = vunpack.c.l.bf16 %v1633_v62 }
  0x34   :  { %v148_v45 = vsel %vm1543_vm2, -inf, %v136_v59 }
  0x35   :  { %v145_v12 = vsel %vm1439_vm3, -inf, %v133_v63 }
  0x36   :  { %620 = vmatmul.mubr.bf16.vlgmr.msra.gmra.mrb[0].mxu0 %v1152_v2  ;;  %671 = vmatmul.mubr.bf16.vlgmr.msra.gmra.mrb[0].mxu1 %v1152_v2  ;;  %v124_v2 = vsel %vm106_vm15, -inf, %v112_v55  ;;  %v149_v30 = vmax.f32 %v127_v9, %v145_v12  ;;  %vm176_vm15 = vmor %vm40_vm8, %vm1446_vm5  ;;  %v104_v55 = vmax.f32 %v82_v20, %v100_v43 }
  0x37   :  { %1043 = vmatprep.mubr.msk.bf16.mxu0 %vm567_vm0, %v988_v3  ;;  %1046 = vmatprep.mubr.msk.bf16.mxu1 %vm567_vm0, %v988_v3  ;;  %vm107_vm0 = vmor %vm37_vm6, %vm1510_vm13  ;;  %v134_v3 = vunpack.c.h.bf16 %v131_v56  ;;  %v128_v11 = vmax.f32 %v102_v61, %v124_v2  ;;  %vm39_vm6 = vcmp.eq.s32.totalorder %v1429_v14, 15  ;;  %v194_v53 = vsel %vm176_vm15, -inf, %v182_v38 }
  0x38   :  { %vm1591_vm14 = vmor %vm39_vm6, %vm1439_vm3  ;;  %v171_v22 = vmax.f32 %v149_v30, %v167_v29  ;;  %v229_v2 = vunpack.c.l.bf16 %v227_v47  ;;  %v696_v14 = vshrl.u32 %v18_v6, 7  ;;  %v184_v6 = vunpack.c.h.bf16 %v1578_v31 }
  0x39   :  { %v146_v17 = vsel %vm1446_vm5, -inf, %v134_v3  ;;  %vm177_vm3 = vmor %vm41_vm9, %vm1456_vm7  ;;  %v193_v50 = vsel %vm1591_vm14, -inf, %v181_v34  ;;  %v206_v29 = vunpack.c.h.bf16 %v1617_v49 }
  0x3a   :  { %v150_v32 = vmax.f32 %v128_v11, %v146_v17  ;;  %vm108_vm5 = vmor %vm38_vm1, %vm1583_vm10  ;;  %v195_v56 = vsel %vm177_vm3, -inf, %v183_v42  ;;  %v197_v61 = vmax.f32 %v171_v22, %v193_v50  ;;  %v721_v21 = vsub.s32 1, %v696_v14 }
  0x3b   :  { %vm223_vm7 = vmor %vm39_vm6, %vm1494_vm11  ;;  %v697_v23 = vsub.s32 0, %v696_v14  ;;  %v749_v27 = vsub.s32 2, %v696_v14  ;;  %v777_v0 = vsub.s32 3, %v696_v14  ;;  %v232_v22 = vunpack.c.h.bf16 %v1633_v62 }
  0x3c   :  { %v172_v24 = vmax.f32 %v150_v32, %v168_v37  ;;  %vm225_vm11 = vmor %vm41_vm9, %vm1510_vm13  ;;  %v241_v10 = vsel %vm223_vm7, -inf, %v229_v2 }
  0x3d   :  { %v243_v18 = vsel %vm225_vm11, -inf, %v231_v41 }
  0x3e   :  { %630 = vmatmul.mubr.bf16.gmra.mrb[4].mxu0 %v987_v5  ;;  %681 = vmatmul.mubr.bf16.gmra.mrb[4].mxu1 %v987_v5  ;;  %v125_v5 = vsel %vm107_vm0, -inf, %v113_v58  ;;  %v126_v58 = vsel %vm108_vm5, -inf, %v114_v46  ;;  %v198_v63 = vmax.f32 %v172_v24, %v194_v53  ;;  %vm224_vm0 = vmor %vm40_vm8, %vm1501_vm12  ;;  %vm42_vm12 = vcmp.eq.s32.totalorder %v1499_v44, 15 }
  0x3f   :  { %v129_v15 = vmax.f32 %v103_v1, %v125_v5  ;;  %v215_v1 = vsel %vm39_vm6, -inf, %v203_v51  ;;  %v130_v5 = vmax.f32 %v104_v55, %v126_v58  ;;  %v242_v13 = vsel %vm224_vm0, -inf, %v230_v4  ;;  %vm178_vm13 = vmor %vm42_vm12, %vm1543_vm2 }
  0x40   :  { %v219_v16 = vmax.f32 %v197_v61, %v215_v1  ;;  %v220_v11 = vmax.f32 %v198_v63, %v216_v60  ;;  %v196_v32 = vsel %vm178_vm13, -inf, %v184_v6  ;;  %vm226_vm1 = vmor %vm42_vm12, %vm1583_vm10 }
  0x41   :  { %v151_v36 = vmax.f32 %v129_v15, %v147_v25  ;;  %v152_v15 = vmax.f32 %v130_v5, %v148_v45  ;;  %v244_v58 = vsel %vm226_vm1, -inf, %v232_v22 }
  0x42   :  { %v245_v19 = vmax.f32 %v219_v16, %v241_v10  ;;  %v246_v25 = vmax.f32 %v220_v11, %v242_v13 }
  0x43   :  { %v173_v52 = vmax.f32 %v151_v36, %v169_v40  ;;  %v174_v28 = vmax.f32 %v152_v15, %v170_v48  ;;  %v218_v40 = vsel %vm42_vm12, -inf, %v206_v29 }
  0x44   :  { %v722_v34 = vrot.slane %v245_v19, %v721_v21  ;;  %v698_v33 = vrot.slane %v245_v19, %v697_v23  ;;  %v726_v36 = vrot.slane %v246_v25, %v721_v21  ;;  %v702_v37 = vrot.slane %v246_v25, %v697_v23 }
  0x45   :  { %v199_v3 = vmax.f32 %v173_v52, %v195_v56  ;;  %v200_v20 = vmax.f32 %v174_v28, %v196_v32  ;;  %v750_v42 = vrot.slane %v245_v19, %v749_v27  ;;  %v754_v24 = vrot.slane %v246_v25, %v749_v27 }
  0x46   :  { %v778_v56 = vrot.slane %v245_v19, %v777_v0  ;;  %v782_v61 = vrot.slane %v246_v25, %v777_v0 }
  0x47   :  { %v221_v12 = vmax.f32 %v199_v3, %v217_v8  ;;  %v222_v47 = vmax.f32 %v200_v20, %v218_v40 }
  0x49   :  { %v247_v26 = vmax.f32 %v221_v12, %v243_v18  ;;  %v248_v44 = vmax.f32 %v222_v47, %v244_v58 }
  0x4b   :  { %v730_v38 = vrot.slane %v247_v26, %v721_v21  ;;  %v706_v39 = vrot.slane %v247_v26, %v697_v23  ;;  %v758_v52 = vrot.slane %v247_v26, %v749_v27  ;;  %v786_v1 = vrot.slane %v247_v26, %v777_v0 }
  0x4c   :  { %v734_v41 = vrot.slane %v248_v44, %v721_v21  ;;  %v710_v14 = vrot.slane %v248_v44, %v697_v23  ;;  %v762_v12 = vrot.slane %v248_v44, %v749_v27  ;;  %v790_v25 = vrot.slane %v248_v44, %v777_v0 }
  0x90   :  { %v1658_v9 = vpop.permute.xlu1 %744  ;;  %v717_v17 = vpop.permute.xlu0 %716 }
  0x91   :  { %v735_v43 = vmul.f32 %v722_v34, %v717_v17  ;;  %v736_v50 = vmul.f32 %v726_v36, %v717_v17  ;;  %v737_v53 = vmul.f32 %v730_v38, %v717_v17  ;;  %v763_v55 = vmul.f32 %v750_v42, %v1658_v9 }
  0x92   :  { %v764_v59 = vmul.f32 %v754_v24, %v1658_v9  ;;  %v765_v63 = vmul.f32 %v758_v52, %v1658_v9  ;;  %v738_v13 = vmul.f32 %v734_v41, %v717_v17  ;;  %v766_v19 = vmul.f32 %v762_v12, %v1658_v9 }
  0x95   :  { %v773_v30 = vpop.permute.xlu1 %772  ;;  %v693_v31 = vpop.permute.xlu0 %692 }
  0x96   :  { %v711_v46 = vmul.f32 %v698_v33, %v693_v31  ;;  %v712_v51 = vmul.f32 %v702_v37, %v693_v31  ;;  %v713_v54 = vmul.f32 %v706_v39, %v693_v31  ;;  %v791_v3 = vmul.f32 %v778_v56, %v773_v30 }
  0x97   :  { %v792_v4 = vmul.f32 %v782_v61, %v773_v30  ;;  %v793_v7 = vmul.f32 %v786_v1, %v773_v30  ;;  %v714_v15 = vmul.f32 %v710_v14, %v693_v31  ;;  %v794_v32 = vmul.f32 %v790_v25, %v773_v30 }
  0x98   :  { %v739_v57 = vadd.f32 %v735_v43, %v711_v46  ;;  %v740_v62 = vadd.f32 %v736_v50, %v712_v51  ;;  %v741_v35 = vadd.f32 %v737_v53, %v713_v54 }
  0x99   :  { %v742_v26 = vadd.f32 %v738_v13, %v714_v15  ;;  %v843_v39 = vpop.permute.xlu0 %842 }
  0x9a   :  { %v767_v60 = vadd.f32 %v763_v55, %v739_v57  ;;  %v768_v5 = vadd.f32 %v764_v59, %v740_v62  ;;  %v769_v8 = vadd.f32 %v765_v63, %v741_v35 }
  0x9b   :  { %v770_v27 = vadd.f32 %v766_v19, %v742_v26 }
  0x9c   :  { %v1672_v49 = vpop.permute.xlu1 %805  ;;  %v795_v45 = vadd.f32 %v791_v3, %v767_v60  ;;  %v796_v11 = vadd.f32 %v792_v4, %v768_v5  ;;  %v797_v10 = vadd.f32 %v793_v7, %v769_v8 }
  0x9d   :  { %v798_v17 = vadd.f32 %v794_v32, %v770_v27 }
  0xa0   :  { %v1681_v2 = vpop.permute.xlu1 %883 }
  0xa4   :  { %v925_v16 = vpop.permute.xlu1 %924 }
  0xa5   :  { %v1683_v48 = vadd.f32 %v925_v16, %v795_v45  ;;  %v1685_v18 = vadd.f32 %v925_v16, %v796_v11  ;;  %v1687_v6 = vadd.f32 %v925_v16, %v797_v10  ;;  %v1693_v29 = vadd.f32 %v925_v16, %v798_v17 }
  0xa7   :  { %v1059_v21 = vmul.f32 -1.442695, %v1683_v48  ;;  %v1060_v23 = vmul.f32 -1.442695, %v1685_v18  ;;  %v1061_v28 = vmul.f32 -1.442695, %v1687_v6 }
  0xa8   :  { %v1062_v9 = vmul.f32 -1.442695, %v1693_v29 }
  0xa9   :  { %1157 = vpow2.f32 %v1059_v21 }
  0xaa   :  { %1159 = vpow2.f32 %v1060_v23 }
  0xab   :  { %1161 = vpow2.f32 %v1061_v28 }
  0xac   :  { %1163 = vpow2.f32 %v1062_v9 }
  0xb3   :  { %v1158_v34 = vpop.eup %1157 }
  0xb4   :  { %v1160_v33 = vpop.eup %1159  ;;  %v943_v31 = vadd.f32 1.0, %v1158_v34 }
  0xb5   :  { %v1162_v36 = vpop.eup %1161  ;;  %v944_v37 = vadd.f32 1.0, %v1160_v33 }
  0xb6   :  { %v945_v38 = vadd.f32 1.0, %v1162_v36  ;;  %1165 = vrcp.f32 %v943_v31  ;;  %v1164_v44 = vpop.eup %1163 }
  0xb7   :  { %1167 = vrcp.f32 %v944_v37 }
  0xb8   :  { %1169 = vrcp.f32 %v945_v38 }
  0xc0   :  { %v1730_v7 = vpop.eup %1165 }
  0xc1   :  { %v1738_v16 = vpop.eup %1167 }
  0xc2   :  { %v1742_v15 = vpop.eup %1169 }
 0x109   :  { %v621_v20 = vpop.f32.mrb[0].mxu0  ;;  %v672_v30 = vpop.f32.mrb[0].mxu1 }
 0x10a   :  { %v1697_v0 = vadd.f32 %v1672_v49, %v621_v20  ;;  %v1700_v40 = vadd.f32 %v1672_v49, %v672_v30  ;;  %v623_v42 = vpop.f32.mrb[1].mxu0  ;;  %v674_v43 = vpop.f32.mrb[1].mxu1 }
 0x10b   :  { %v1703_v46 = vadd.f32 %v1672_v49, %v623_v42  ;;  %v1706_v22 = vadd.f32 %v1672_v49, %v674_v43  ;;  %v625_v24 = vpop.f32.mrb[2].mxu0  ;;  %v676_v50 = vpop.f32.mrb[2].mxu1 }
 0x10c   :  { %v1047_v51 = vmul.f32 -1.442695, %v1697_v0  ;;  %v1049_v52 = vmul.f32 -1.442695, %v1700_v40  ;;  %v1710_v53 = vadd.f32 %v843_v39, %v625_v24  ;;  %v1712_v54 = vadd.f32 %v843_v39, %v676_v50  ;;  %v627_v47 = vpop.f32.mrb[3].mxu0  ;;  %v678_v55 = vpop.f32.mrb[3].mxu1 }
 0x10d   :  { %v1048_v56 = vmul.f32 -1.442695, %v1703_v46  ;;  %v1050_v57 = vmul.f32 -1.442695, %v1706_v22  ;;  %v1716_v58 = vadd.f32 %v843_v39, %v627_v47  ;;  %v1718_v49 = vadd.f32 %v843_v39, %v678_v55 }
 0x10e   :  { %1171 = vpow2.f32 %v1047_v51  ;;  %v1051_v59 = vmul.f32 -1.442695, %v1710_v53  ;;  %v1053_v61 = vmul.f32 -1.442695, %v1712_v54 }
 0x10f   :  { %1173 = vpow2.f32 %v1049_v52  ;;  %v1052_v62 = vmul.f32 -1.442695, %v1716_v58  ;;  %v1054_v63 = vmul.f32 -1.442695, %v1718_v49 }
 0x110   :  { %1175 = vpow2.f32 %v1048_v56 }
 0x111   :  { %1177 = vpow2.f32 %v1050_v57  ;;  %v631_v1 = vpop.f32.mrb[4].mxu0  ;;  %v682_v35 = vpop.f32.mrb[4].mxu1 }
 0x112   :  { %1179 = vpow2.f32 %v1051_v59  ;;  %v1725_v3 = vadd.f32 %v1681_v2, %v631_v1  ;;  %v1728_v60 = vadd.f32 %v1681_v2, %v682_v35  ;;  %v633_v4 = vpop.f32.mrb[5].mxu0  ;;  %v684_v5 = vpop.f32.mrb[5].mxu1 }
 0x113   :  { %1181 = vpow2.f32 %v1053_v61  ;;  %v1733_v8 = vadd.f32 %v1681_v2, %v633_v4  ;;  %v1736_v41 = vadd.f32 %v1681_v2, %v684_v5  ;;  %v635_v14 = vpop.f32.mrb[6].mxu0  ;;  %v686_v45 = vpop.f32.mrb[6].mxu1  ;;  %v946_v2 = vadd.f32 1.0, %v1164_v44 }
 0x114   :  { %1183 = vpow2.f32 %v1052_v62  ;;  %v1055_v11 = vmul.f32 -1.442695, %v1725_v3  ;;  %v1057_v10 = vmul.f32 -1.442695, %v1728_v60  ;;  %v636_v12 = vpop.f32.mrb[7].mxu0  ;;  %v687_v13 = vpop.f32.mrb[7].mxu1 }
 0x115   :  { %1185 = vpow2.f32 %v1054_v63  ;;  %v1056_v19 = vmul.f32 -1.442695, %v1733_v8  ;;  %v1058_v25 = vmul.f32 -1.442695, %v1736_v41 }
 0x116   :  { %1187 = vpow2.f32 %v1055_v11 }
 0x117   :  { %1189 = vpow2.f32 %v1057_v10 }
 0x118   :  { %v1172_v26 = vpop.eup %1171  ;;  %1191 = vpow2.f32 %v1056_v19 }
 0x119   :  { %v1174_v21 = vpop.eup %1173  ;;  %v824_v23 = vadd.f32 1.0, %v1172_v26  ;;  %1193 = vpow2.f32 %v1058_v25 }
 0x11a   :  { %v1176_v28 = vpop.eup %1175  ;;  %1195 = vrcp.f32 %v946_v2  ;;  %v826_v32 = vadd.f32 1.0, %v1174_v21 }
 0x11b   :  { %v1178_v27 = vpop.eup %1177  ;;  %1197 = vrcp.f32 %v824_v23  ;;  %v825_v17 = vadd.f32 1.0, %v1176_v28 }
 0x11c   :  { %v1180_v34 = vpop.eup %1179  ;;  %1199 = vrcp.f32 %v826_v32  ;;  %v827_v33 = vadd.f32 1.0, %v1178_v27 }
 0x11d   :  { %v1182_v36 = vpop.eup %1181  ;;  %1201 = vrcp.f32 %v825_v17  ;;  %v861_v9 = vadd.f32 1.0, %v1180_v34 }
 0x11e   :  { %v1184_v31 = vpop.eup %1183  ;;  %1203 = vrcp.f32 %v827_v33  ;;  %v863_v37 = vadd.f32 1.0, %v1182_v36 }
 0x11f   :  { %v1186_v38 = vpop.eup %1185  ;;  %1205 = vrcp.f32 %v861_v9  ;;  %v862_v39 = vadd.f32 1.0, %v1184_v31 }
 0x120   :  { %v1188_v20 = vpop.eup %1187  ;;  %1207 = vrcp.f32 %v863_v37  ;;  %v864_v30 = vadd.f32 1.0, %v1186_v38 }
 0x121   :  { %v1190_v42 = vpop.eup %1189  ;;  %1209 = vrcp.f32 %v862_v39  ;;  %v902_v43 = vadd.f32 1.0, %v1188_v20 }
 0x122   :  { %v1192_v24 = vpop.eup %1191  ;;  %1211 = vrcp.f32 %v864_v30  ;;  %v904_v50 = vadd.f32 1.0, %v1190_v42 }
 0x123   :  { %v1194_v51 = vpop.eup %1193  ;;  %1213 = vrcp.f32 %v902_v43  ;;  %v903_v52 = vadd.f32 1.0, %v1192_v24 }
 0x124   :  { %v1196_v47 = vpop.eup %1195  ;;  %1215 = vrcp.f32 %v904_v50  ;;  %v905_v55 = vadd.f32 1.0, %v1194_v51 }
 0x125   :  { %v1198_v56 = vpop.eup %1197  ;;  %1217 = vrcp.f32 %v903_v52 }
 0x126   :  { %v1200_v57 = vpop.eup %1199  ;;  %1219 = vrcp.f32 %v905_v55  ;;  %v836_v1 = vmul.f32 %v1198_v56, %v1697_v0 }
 0x127   :  { %v1202_v59 = vpop.eup %1201  ;;  %v838_v4 = vmul.f32 %v1200_v57, %v1700_v40 }
 0x128   :  { %v1204_v61 = vpop.eup %1203  ;;  %v837_v45 = vmul.f32 %v1202_v59, %v1703_v46  ;;  %v955_v46 = vmul.f32 %v1730_v7, %v1683_v48 }
 0x129   :  { %v1206_v62 = vpop.eup %1205  ;;  %v839_v13 = vmul.f32 %v1204_v61, %v1706_v22  ;;  %v957_v22 = vmul.f32 %v1742_v15, %v1687_v6 }
 0x12a   :  { %v1208_v63 = vpop.eup %1207  ;;  %v873_v35 = vmul.f32 %v1206_v62, %v1710_v53 }
 0x12b   :  { %v1210_v44 = vpop.eup %1209  ;;  %v875_v5 = vmul.f32 %v1208_v63, %v1712_v54 }
 0x12c   :  { %v1212_v14 = vpop.eup %1211  ;;  %v877_v11 = vadd.f32 %v873_v35, %v836_v1  ;;  %v874_v10 = vmul.f32 %v1210_v44, %v1716_v58 }
 0x12d   :  { %v1214_v12 = vpop.eup %1213  ;;  %v879_v19 = vadd.f32 %v875_v5, %v838_v4  ;;  %v876_v25 = vmul.f32 %v1212_v14, %v1718_v49 }
 0x12e   :  { %v1216_v0 = vpop.eup %1215  ;;  %v878_v2 = vadd.f32 %v874_v10, %v837_v45  ;;  %v914_v53 = vmul.f32 %v1214_v12, %v1725_v3  ;;  %v956_v3 = vmul.f32 %v1738_v16, %v1685_v18 }
 0x12f   :  { %v1218_v26 = vpop.eup %1217  ;;  %v880_v40 = vadd.f32 %v876_v25, %v839_v13  ;;  %v916_v54 = vmul.f32 %v1216_v0, %v1728_v60  ;;  %v958_v60 = vmul.f32 %v1196_v47, %v1693_v29 }
 0x130   :  { %v1220_v21 = vpop.eup %1219  ;;  %v918_v23 = vadd.f32 %v914_v53, %v877_v11  ;;  %v915_v58 = vmul.f32 %v1218_v26, %v1733_v8 }
 0x131   :  { %v920_v28 = vadd.f32 %v916_v54, %v879_v19  ;;  %v917_v49 = vmul.f32 %v1220_v21, %v1736_v41 }
 0x132   :  { %v959_v32 = vadd.f32 %v955_v46, %v918_v23  ;;  %v919_v27 = vadd.f32 %v915_v58, %v878_v2 }
 0x133   :  { %v961_v17 = vadd.f32 %v957_v22, %v920_v28  ;;  %v921_v34 = vadd.f32 %v917_v49, %v880_v40 }
 0x134   :  { %v960_v33 = vadd.f32 %v956_v3, %v919_v27 }
 0x135   :  { %v962_v48 = vadd.f32 %v958_v60, %v921_v34 }
 0x136   :  { %v1065_v7 = vpack.c.bf16 %v960_v33, %v959_v32 }
 0x137   :  { %v1066_v36 = vpack.c.bf16 %v962_v48, %v961_v17 }
 0x138   :  { %979 = vst [vmem:[%s1775_s4] sm:$0xff] %v1065_v7 }
 0x139   :  { %980 = vst [vmem:[%s1775_s4 + $0x8] sm:$0xff] %v1066_v36 }

</bundles_post_ra>
